<compile_context>
chip_gen: v6e
topology: v6e:2x2x1
jax: 0.10.0
libtpu: 0.0.40
codegen_flags: <defaults>
</compile_context>

<pallas_src>
import functools

import jax
import jax.numpy as jnp
import numpy as np
from jax.experimental import pallas as pl
from jax.experimental.pallas import tpu as pltpu


_VMEM_LIMIT_BYTES = 48 * 1024 * 1024   # explicit scoped-VMEM limit (fits v5e/v6e/v7x)
_VMEM_BUDGET_BYTES = 40 * 1024 * 1024  # tile budget, headroom for internal scratch


def _round_up(x, m):
    return ((x + m - 1) // m) * m


def _apply_activation(x, activation):
    if activation == "relu":
        return jnp.maximum(x, 0.0)
    if activation == "tanh":
        return jnp.tanh(x)
    if activation == "sigmoid":
        return jax.nn.sigmoid(x)
    if activation in (None, "none", "identity"):
        return x
    raise ValueError(f"unsupported activation: {activation!r}")


def _node_apply_kernel(h_ref, w_ref, b_ref, o_ref, *, activation):
    # h_ref: (TILE_ROWS, in_feats)   row tile of node features
    # w_ref: (in_feats, TILE_N)      pre-transposed weight column tile
    # b_ref: (1, TILE_N)             bias column tile
    # o_ref: (TILE_ROWS, TILE_N)     lane-dense output tile
    acc = jnp.dot(h_ref[...], w_ref[...], preferred_element_type=jnp.float32)
    acc = acc + b_ref[...]
    acc = _apply_activation(acc, activation)
    o_ref[...] = acc.astype(o_ref.dtype)


def node_apply(h, weight, bias, *, activation="relu", tile_rows=512,
               min_pallas_elems=4096):
    """h: [N, in_feats] f32, weight: [out_feats, in_feats] f32, bias: [out_feats] f32.

    Returns activation(h @ weight.T + bias) with shape [N, out_feats].
    """
    N, in_feats = h.shape
    out_feats = weight.shape[0]

    # Tiny problems: pad/launch/per-step overhead dominates -> plain JAX.
    if N * max(in_feats, out_feats) < min_pallas_elems:
        return _apply_activation(h @ weight.T + bias, activation).astype(h.dtype)

    out_pad = _round_up(out_feats, 128)

    # Column tile: largest of 512/256/128 dividing out_pad whose double-buffered
    # weight tile stays within half the budget.
    tile_n = None
    for cand in (512, 256, 128):
        if out_pad % cand == 0 and 2 * 4 * in_feats * cand <= _VMEM_BUDGET_BYTES // 2:
            tile_n = cand
            break
    if tile_n is None:
        # TODO(synk): add a K-tiled accumulator path for very large in_feats.
        return _apply_activation(h @ weight.T + bias, activation).astype(h.dtype)

    # Row tile: default 512 (multiple of 256 for the v6e/v7x MXU), sublane-aligned,
    # shrunk against a budget that counts 2x buffering for every pipelined spec.
    tr = _round_up(min(tile_rows, _round_up(N, 8)), 8)

    def _tile_bytes(t):
        return 2 * 4 * (t * in_feats + t * tile_n + in_feats * tile_n + tile_n)

    while tr > 8 and _tile_bytes(tr) > _VMEM_BUDGET_BYTES:
        tr = max(8, _round_up(tr // 2, 8))

    grid = (pl.cdiv(N, tr), out_pad // tile_n)

    # One-time weight-sized prep only; the big h stream is NOT padded/copied.
    w_t = weight.T                                   # [in_feats, out_feats]
    b_p = bias.reshape(1, out_feats)
    if out_pad != out_feats:
        w_t = jnp.pad(w_t, ((0, 0), (0, out_pad - out_feats)))
        b_p = jnp.pad(b_p, ((0, 0), (0, out_pad - out_feats)))

    cost = pl.CostEstimate(
        flops=2 * N * in_feats * out_pad,
        transcendentals=N * out_pad if activation in ("tanh", "sigmoid") else 0,
        bytes_accessed=4 * (N * in_feats + in_feats * out_pad + out_pad
                            + N * out_pad),
    )

    kernel = functools.partial(_node_apply_kernel, activation=activation)

    out_padded = pl.pallas_call(
        kernel,
        out_shape=jax.ShapeDtypeStruct((N, out_pad), h.dtype),
        grid_spec=pltpu.PrefetchScalarGridSpec(
            num_scalar_prefetch=0,
            grid=grid,
            in_specs=[
                # row tile of h marches down the node dimension (ragged last block
                # is masked by Pallas -> no wrapper pad of h)
                pl.BlockSpec((tr, in_feats), lambda i, j: (i, 0)),
                # weight / bias column tiles march across the output dimension
                pl.BlockSpec((in_feats, tile_n), lambda i, j: (0, j)),
                pl.BlockSpec((1, tile_n), lambda i, j: (0, j)),
            ],
            out_specs=pl.BlockSpec((tr, tile_n), lambda i, j: (i, j)),
        ),
        compiler_params=pltpu.CompilerParams(
            # Both axes independent (no reduction axis in the grid).
            # On v7x, CORE_PARALLEL on the row axis would engage the 2nd
            # TensorCore; plain "parallel" is the portable/safe choice here.
            dimension_semantics=("parallel", "parallel"),
            vmem_limit_bytes=_VMEM_LIMIT_BYTES,
        ),
        cost_estimate=cost,
    )(h, w_t, b_p)

    if out_pad != out_feats:
        return out_padded[:, :out_feats]
    return out_padded


def init_params(key, in_feats, out_feats):
    """Kaiming-normal (fan_in, leaky_relu a=0) weight init + nn.Linear default bias init."""
    kw, kb = jax.random.split(key)
    std = np.sqrt(2.0 / in_feats)
    weight = std * jax.random.normal(kw, (out_feats, in_feats), dtype=jnp.float32)
    bound = 1.0 / np.sqrt(in_feats)
    bias = jax.random.uniform(kb, (out_feats,), minval=-bound, maxval=bound,
                              dtype=jnp.float32)
    return weight, bias


if __name__ == "__main__":
    key = jax.random.PRNGKey(0)
    k1, k2, k3, k4 = jax.random.split(key, 4)

    # Case 1: tiny graph (8 nodes, hidden=32), forced through the Pallas kernel.
    in_feats, out_feats = 32, 32
    h_small = jax.random.normal(k1, (8, in_feats), dtype=jnp.float32)
    w_small, b_small = init_params(k2, in_feats, out_feats)

    out_small = jax.block_until_ready(
        node_apply(h_small, w_small, b_small, min_pallas_elems=0))
    ref_small = jnp.maximum(h_small @ w_small.T + b_small, 0.0)
    np.testing.assert_allclose(np.asarray(out_small), np.asarray(ref_small),
                               rtol=1e-5, atol=1e-5)

    # Same tiny case via the default path (plain-JAX fallback for tiny N).
    out_fb = jax.block_until_ready(node_apply(h_small, w_small, b_small))
    np.testing.assert_allclose(np.asarray(out_fb), np.asarray(ref_small),
                               rtol=1e-5, atol=1e-5)

    # Case 2: modest graph exercising ragged row blocks (600 nodes, 512-row tile)
    # and non-128-multiple out_feats (47) -> padded weight columns + output slice.
    N2, in2, out2 = 600, 32, 47
    h_big = jax.random.normal(k3, (N2, in2), dtype=jnp.float32)
    w_big, b_big = init_params(k4, in2, out2)

    out_big = jax.block_until_ready(node_apply(h_big, w_big, b_big))
    ref_big = jnp.maximum(h_big @ w_big.T + b_big, 0.0)
    np.testing.assert_allclose(np.asarray(out_big), np.asarray(ref_big),
                               rtol=1e-5, atol=1e-5)
    assert out_big.shape == (N2, out2)

    print("KERNEL_OK")
</pallas_src>

<mosaic_0001>
module attributes {stable_mosaic.version = 11 : i64} {
  func.func @_node_apply_kernel(%arg0: i32, %arg1: i32, %arg2: memref<8x32xf32, #tpu.memory_space<vmem>>, %arg3: memref<32x128xf32, #tpu.memory_space<vmem>>, %arg4: memref<1x128xf32, #tpu.memory_space<vmem>>, %arg5: memref<8x128xf32, #tpu.memory_space<vmem>>) attributes {dimension_semantics = [#tpu.dimension_semantics<parallel>, #tpu.dimension_semantics<parallel>], iteration_bounds = array<i64: 1, 1>, scalar_prefetch = 0 : i64, scratch_operands = 0 : i64, tpu.core_type = #tpu.core_type<tc>, window_params = [{transform_indices = @transform_0, window_bounds = array<i64: 8, 32>}, {transform_indices = @transform_1, window_bounds = array<i64: 32, 128>}, {transform_indices = @transform_2, window_bounds = array<i64: 1, 128>}, {transform_indices = @transform_3, window_bounds = array<i64: 8, 128>}]} {
    %c0 = arith.constant 0 : index
    %c0_0 = arith.constant 0 : index
    %0 = vector.load %arg2[%c0, %c0_0] : memref<8x32xf32, #tpu.memory_space<vmem>>, vector<8x32xf32>
    %c0_1 = arith.constant 0 : index
    %c0_2 = arith.constant 0 : index
    %1 = vector.load %arg3[%c0_1, %c0_2] : memref<32x128xf32, #tpu.memory_space<vmem>>, vector<32x128xf32>
    %cst = arith.constant dense<0.000000e+00> : vector<8x128xf32>
    %2 = tpu.matmul %0, %1, %cst {dimension_numbers = #tpu.dot_dimension_numbers<[1], [0], [0], [1], [0, 0, 1, 1], [], []>} : vector<8x32xf32>, vector<32x128xf32>, vector<8x128xf32> -> vector<8x128xf32>
    %c0_3 = arith.constant 0 : index
    %c0_4 = arith.constant 0 : index
    %3 = vector.load %arg4[%c0_3, %c0_4] : memref<1x128xf32, #tpu.memory_space<vmem>>, vector<1x128xf32>
    %4 = vector.broadcast %3 : vector<1x128xf32> to vector<8x128xf32>
    %5 = arith.addf %2, %4 : vector<8x128xf32>
    %cst_5 = arith.constant 0.000000e+00 : f32
    %6 = vector.broadcast %cst_5 : f32 to vector<8x128xf32>
    %7 = arith.maximumf %5, %6 : vector<8x128xf32>
    %c0_6 = arith.constant 0 : index
    %c0_7 = arith.constant 0 : index
    %8 = vector.load %arg5[%c0_6, %c0_7] : memref<8x128xf32, #tpu.memory_space<vmem>>, vector<8x128xf32>
    tpu.vector_store %arg5[%c0_6, %c0_7], %7 {strides = array<i32>} : memref<8x128xf32, #tpu.memory_space<vmem>>, vector<8x128xf32>,
    return
  }
  func.func @transform_0(%arg0: i32, %arg1: i32) -> (i32, i32) {
    %c0_i32 = arith.constant 0 : i32
    %c0_i32_0 = arith.constant 0 : i32
    return %arg0, %c0_i32 : i32, i32
  }
  func.func @transform_1(%arg0: i32, %arg1: i32) -> (i32, i32) {
    %c0_i32 = arith.constant 0 : i32
    %c0_i32_0 = arith.constant 0 : i32
    return %c0_i32, %arg1 : i32, i32
  }
  func.func @transform_2(%arg0: i32, %arg1: i32) -> (i32, i32) {
    %c0_i32 = arith.constant 0 : i32
    %c0_i32_0 = arith.constant 0 : i32
    return %c0_i32, %arg1 : i32, i32
  }
  func.func @transform_3(%arg0: i32, %arg1: i32) -> (i32, i32) {
    %c0_i32 = arith.constant 0 : i32
    return %arg0, %arg1 : i32, i32
  }
}

</mosaic_0001>

<bundles_post_ra>
// kernel: tpu_custom_call.1
= control target key start
LH: loop header
LB: loop body
LE: loop exit
PB: predicated region body
PF: predicated region fallthrough
CT: control target
= control target key end

     0   :  { %8 = vsyncpa [#allocation3], 0  ;;  %s275_s0 = inlined_call_operand.hbm [shape: f32[8,32], index: 0, kind: input, shape index: {}]   ;;  %s276_s1 = inlined_call_operand.hbm [shape: f32[32,128], index: 1, kind: input, shape index: {}]   ;;  %s277_s2 = inlined_call_operand.vmem [shape: f32[1,128], index: 2, kind: input, shape index: {}]   ;;  %s278_s3 = inlined_call_operand.hbm [shape: f32[8,128], index: 3, kind: output, shape index: {}]  }
   0x1   :  { %9 = vsyncpa [#allocation6], 0 }
   0x2   :  { %10 = vsyncpa [#allocation4], 0  ;;  %s236_s12 = smov [#allocation2]   ;;  %s237_s14 = smov [#allocation5]  }
   0x3   :  { %s17_s13 = sshll.u32 %s236_s12, 4  ;;  %s26_s15 = sshll.u32 %s237_s14, 4  ;;  %s18_s13 = int_to_ptr.vmem [resolvable:$true] %s17_s13  ;;  %s27_s15 = int_to_ptr.vmem [resolvable:$true] %s26_s15 }
   0x4   :  { %s178_s16 = scalar_lea.vmem %s18_s13, 128  ;;  %p183_p1 = scmp.lt.s32.totalorder %s18_s13, %s18_s13 }
   0x5   :  { %p179_p0 = scmp.ne.s32.totalorder %s18_s13, %s178_s16  ;;  %p184_p2 = scmp.lt.s32.totalorder %s178_s16, %s178_s16 }
   0x7   :  { %p185_p3 = por %p184_p2, %p183_p1 }
   0x9   :  { %p186_p4 = pnand %p185_p3, %p179_p0 }
   0xb   :  { %189 = shalt.err (!%p186_p4)
}
   0xc   :  { %20 = dma.hbm_to_vmem [thread:$0]  %s275_s0, 128, %s18_s13, [#allocation3]  }
   0xd   :  { %s198_s19 = scalar_lea.vmem %s27_s15, 512  ;;  %p203_p6 = scmp.lt.s32.totalorder %s27_s15, %s27_s15 }
   0xe   :  { %p199_p5 = scmp.ne.s32.totalorder %s27_s15, %s198_s19  ;;  %p204_p7 = scmp.lt.s32.totalorder %s198_s19, %s198_s19 }
  0x10   :  { %p205_p8 = por %p204_p7, %p203_p6 }
  0x12   :  { %p206_p9 = pnand %p205_p8, %p199_p5 }
  0x14   :  { %209 = shalt.err (!%p206_p9)
}
  0x15   :  { %s238_s20 = smov 128   ;;  %s239_s21 = smov 8  }
  0x16   :  { %32 = dma.hbm_to_vmem [thread:$0]  %s276_s1, 512, %s27_s15, [#allocation6], %s238_s20, %s238_s20, %s239_s21  }
  0x17   :  { %230 = dma.done.wait [#allocation3], 128  }
  0x18   :  { %231 = vsyncadd [#allocation3], 4294967168 }
  0x19   :  { %232 = dma.done.wait [#allocation6], 512  }
  0x1a   :  { %233 = vsyncadd [#allocation6], 4294966784  ;;  %v240_v0 = vmov 0.0   ;;  %vm241_vm0 = vmmov 0   ;;  %v45_v1 = vld [vmem:[#allocation5 + $0x18] sm:$0xff]  ;;  %v44_v2 = vld [vmem:[#allocation5 + $0x10] sm:$0xff] }
  0x1b   :  { %152 = vmatprep.subr.mxu0 %v240_v0  ;;  %160 = vmatprep.mubr.msk.f32.mxu0 %vm241_vm0, %v240_v0  ;;  %v43_v3 = vld [vmem:[#allocation5 + $0x8] sm:$0xff]  ;;  %v42_v4 = vld [vmem:[#allocation5] sm:$0xff]  ;;  %v41_v5 = vld [vmem:[#allocation2] sm:$0xff]  ;;  %vm53_vm1 = vcmask 261120   ;;  %s242_s24 = smov [#allocation7]  }
  0x1c   :  { %153 = vmatpush3.msra.mxu0 %v45_v1  ;;  %v145_v6 = vld [vmem:[%s277_s2] ss:$0 sm:$0xff]  ;;  %s135_s25 = sshll.u32 %s242_s24, 4  ;;  %s136_s25 = int_to_ptr.vmem [resolvable:$true] %s135_s25 }
  0x1d   :  { %154 = vmatprep.subr.mxu0 %v240_v0  ;;  %s210_s26 = scalar_lea.vmem %s136_s25, 128  ;;  %p215_p11 = scmp.lt.s32.totalorder %s136_s25, %s136_s25 }
  0x1e   :  { %155 = vmatpush3.msra.mxu0 %v44_v2  ;;  %p211_p10 = scmp.ne.s32.totalorder %s136_s25, %s210_s26  ;;  %p216_p12 = scmp.lt.s32.totalorder %s210_s26, %s210_s26 }
  0x1f   :  { %156 = vmatprep.subr.mxu0 %v240_v0 }
  0x20   :  { %157 = vmatpush3.msra.mxu0 %v43_v3  ;;  %p217_p13 = por %p216_p12, %p215_p11 }
  0x21   :  { %158 = vmatprep.subr.mxu0 %v240_v0 }
  0x22   :  { %159 = vmatpush3.msra.mxu0 %v42_v4  ;;  %p218_p0 = pnand %p217_p13, %p211_p10 }
  0x23   :  { %161 = vmatmul.mubr.msk.f32.vlgmr.msra.gmra.mxu0 %vm53_vm1, %v41_v5 }
  0xe3   :  { %v123_v7 = vpop.f32.mrf.mxu0 }
  0xe4   :  { %v124_v8 = vadd.f32 %v145_v6, %v123_v7 }
  0xe5   :  { %v162_v9 = vpop.f32.mrf.mxu0 }
  0xe6   :  { %v127_v10 = vmax.f32 %v124_v8, 0.0 }
  0xe8   :  { %128 = vst [vmem:[#allocation7] sm:$0xff] %v127_v10 }
  0xe9   :  { %221 = shalt.err (!%p218_p0)
}
  0xea   :  { %138 = dma.vmem_to_hbm [thread:$0]  %s136_s25, 128, %s278_s3, [#allocation4]  }
  0xeb   :  { %234 = dma.done.wait [#allocation4], 128  }
  0xec   :  { %235 = vsyncadd [#allocation4], 4294967168 }
  0xed   :  { %142 = vsyncpa [#allocation3], 1 }
  0xee   :  { %143 = vsyncpa [#allocation6], 1 }
  0xef   :  { %144 = vsyncpa [#allocation4], 1 }

</bundles_post_ra>
